<compile_context>
chip_gen: v7x
topology: tpu7x:2x2x1
jax: 0.10.0
libtpu: 0.0.40
codegen_flags: <defaults>
</compile_context>

<pallas_src>
import functools

import jax
import jax.numpy as jnp
from jax import lax
from jax.experimental import pallas as pl
from jax.experimental.pallas import tpu as pltpu


# ----------------------------------------------------------------------------
# Helpers
# ----------------------------------------------------------------------------
def _round_up(a, b):
    return ((a + b - 1) // b) * b


def _round_down(a, b):
    return (a // b) * b


def _pad_min(dtype):
    dtype = jnp.dtype(dtype)
    if jnp.issubdtype(dtype, jnp.floating):
        return float("-inf")
    if jnp.issubdtype(dtype, jnp.integer):
        return int(jnp.iinfo(dtype).min)
    raise ValueError(f"unsupported dtype for max-pool: {dtype}")


def _vmem_capacity_bytes():
    try:
        cap = int(pltpu.get_tpu_info().vmem_capacity_bytes)
        if cap > 0:
            return cap
    except Exception:
        pass
    return 64 * 1024 * 1024  # conservative (v7x per-TensorCore)


# ----------------------------------------------------------------------------
# Kernel
# ----------------------------------------------------------------------------
def _gmp_kernel(x_ref, o_ref, acc_ref, *, l_total, pad_val, lane_dense):
    """Grid = (row tiles, L tiles); L (reduction) axis is last."""
    tile_n, tile_l = x_ref.shape
    j = pl.program_id(1)
    n_l = pl.num_programs(1)

    # ---- per-step row max; mask the ragged tail of L in-kernel (no wrapper pad)
    rem = l_total % tile_l  # static
    if rem != 0:
        lane = lax.broadcasted_iota(jnp.int32, (1, tile_l), 1)
        keep = jnp.logical_or(j < n_l - 1, lane < rem)          # (1, tile_l)
        x = jnp.where(keep, x_ref[...], jnp.asarray(pad_val, dtype=x_ref.dtype))
    else:
        x = x_ref[...]
    part = jnp.max(x, axis=-1, keepdims=True)                    # (tile_n, 1)

    # ---- running max across L tiles (VMEM scratch, re-init at j == 0)
    @pl.when(j == 0)
    def _():
        acc_ref[...] = part

    @pl.when(j > 0)
    def _():
        acc_ref[...] = jnp.maximum(acc_ref[...], part)

    # ---- finalize once per row tile
    @pl.when(j == n_l - 1)
    def _():
        if lane_dense:
            # (tile_n, 1) -> lane-dense (1, tile_n): per 128-row group do a lane
            # broadcast, a 128x128 transpose and a sublane reduce, then one full
            # 128-lane store.  Keeps the relayout register-resident.
            for g in range(tile_n // 128):
                col = acc_ref[g * 128:(g + 1) * 128, :]           # (128, 1)
                if jnp.dtype(col.dtype).itemsize < 4:
                    col = col.astype(jnp.float32)                 # lossless for bf16/int8/...
                sq = jnp.broadcast_to(col, (128, 128))
                row = jnp.max(jnp.transpose(sq), axis=0, keepdims=True)  # (1, 128)
                o_ref[:, g * 128:(g + 1) * 128] = row.astype(o_ref.dtype)
        else:
            # Small-N path: single tiny block, plain (N, 1) store.
            o_ref[...] = acc_ref[...].astype(o_ref.dtype)


# ----------------------------------------------------------------------------
# Wrapper
# ----------------------------------------------------------------------------
def gmp_self_attention(x, *, target_block_bytes=None):
    """AdaptiveMaxPool1d(1) over the last axis of a (N, L) input -> (N, 1)."""
    N, L = x.shape
    dtype = x.dtype
    itemsize = jnp.dtype(dtype).itemsize
    pad_val = _pad_min(dtype)

    # Per-input-buffer block budget (Pallas double-buffers it).
    vmem_cap = _vmem_capacity_bytes()
    if target_block_bytes is None:
        target_block_bytes = min(vmem_cap // 8, 16 * 1024 * 1024)
    target_block_bytes = max(int(target_block_bytes), 128 * 128 * itemsize)

    L128 = _round_up(L, 128)
    n_ceil = _round_up(N, 128)
    lane_dense = N >= 128

    def _cap_rows(rows):
        rows = min(int(rows), n_ceil, 8192)
        if N >= 256:
            # Keep >= 2 row tiles so v7x's two TensorCores / the pipeline have work.
            rows = min(rows, max(128, _round_down(n_ceil // 2, 128)))
        return max(128, _round_down(rows, 128))

    if lane_dense:
        tile_l = L128
        if 128 * tile_l * itemsize > target_block_bytes:
            # Full L does not fit with 128 rows: tile the reduction axis too.
            tile_l = max(128, min(L128, _round_down(
                target_block_bytes // (128 * itemsize), 128)))
        tile_n = _cap_rows(max(target_block_bytes // (tile_l * itemsize), 128))
    else:
        tile_n = N
        tile_l = max(128, min(L128, _round_down(
            target_block_bytes // max(1, tile_n * itemsize), 128)))

    grid = (pl.cdiv(N, tile_n), pl.cdiv(L, tile_l))

    if lane_dense:
        out_shape = jax.ShapeDtypeStruct((1, N), dtype)
        out_spec = pl.BlockSpec((1, tile_n), lambda i, j: (0, i))
        out_block_bytes = tile_n * itemsize
    else:
        out_shape = jax.ShapeDtypeStruct((N, 1), dtype)
        out_spec = pl.BlockSpec((tile_n, 1), lambda i, j: (i, 0))
        out_block_bytes = tile_n * itemsize

    # Explicit scoped-VMEM limit: 2x input blocks (double buffering) + output
    # blocks + accumulator + slack.  Safe on v5e's 16 MiB default and within
    # v7x's 64 MiB physical VMEM.
    in_block_bytes = tile_n * tile_l * itemsize
    acc_bytes = tile_n * 128 * max(itemsize, 4)
    vmem_needed = 2 * in_block_bytes + 2 * out_block_bytes + acc_bytes + (2 << 20)
    vmem_limit = int(min(max(vmem_needed, 16 << 20), int(vmem_cap * 0.7)))

    cost = pl.CostEstimate(
        flops=N * L,
        transcendentals=0,
        bytes_accessed=N * L * itemsize + N * itemsize,
    )

    kernel = functools.partial(_gmp_kernel, l_total=L, pad_val=pad_val,
                               lane_dense=lane_dense)

    out = pl.pallas_call(
        kernel,
        out_shape=out_shape,
        grid_spec=pltpu.PrefetchScalarGridSpec(
            num_scalar_prefetch=0,
            grid=grid,
            in_specs=[pl.BlockSpec((tile_n, tile_l), lambda i, j: (i, j))],
            out_specs=out_spec,
            scratch_shapes=[pltpu.VMEM((tile_n, 1), dtype)],
        ),
        compiler_params=pltpu.CompilerParams(
            dimension_semantics=("parallel", "arbitrary"),
            vmem_limit_bytes=vmem_limit,
        ),
        cost_estimate=cost,
    )(x)

    return out.reshape(N, 1) if lane_dense else out


# ----------------------------------------------------------------------------
# Self-test
# ----------------------------------------------------------------------------
if __name__ == "__main__":
    # 1) Module-like shape (L=1024): lane-dense output, whole L per block,
    #    >= 2 row tiles.
    N, L = 256, 1024
    x = jax.random.normal(jax.random.PRNGKey(0), (N, L), dtype=jnp.float32)
    out = jax.block_until_ready(gmp_self_attention(x))
    ref = jnp.max(x, axis=-1, keepdims=True)
    assert out.shape == (N, 1)
    assert bool(jnp.allclose(out, ref)), "lane-dense full-L path mismatch"

    # 2) Small ragged N (< 128) + ragged L + forced L tiling
    #    (exercises in-kernel tail masking and the running-max accumulator).
    x2 = jax.random.normal(jax.random.PRNGKey(1), (96, 1000), dtype=jnp.float32)
    out2 = jax.block_until_ready(
        gmp_self_attention(x2, target_block_bytes=128 * 1024))
    ref2 = jnp.max(x2, axis=-1, keepdims=True)
    assert out2.shape == (96, 1)
    assert bool(jnp.allclose(out2, ref2)), "small-N tiled-L path mismatch"

    # 3) Lane-dense + ragged N + multi-L-step + ragged last L tile (no wrapper pad).
    x3 = jax.random.normal(jax.random.PRNGKey(2), (300, 2000), dtype=jnp.float32)
    out3 = jax.block_until_ready(
        gmp_self_attention(x3, target_block_bytes=256 * 1024))
    ref3 = jnp.max(x3, axis=-1, keepdims=True)
    assert out3.shape == (300, 1)
    assert bool(jnp.allclose(out3, ref3)), "lane-dense tiled-L path mismatch"

    print("KERNEL_OK")
</pallas_src>

<mosaic_0001>
module attributes {stable_mosaic.version = 11 : i64} {
  func.func @_gmp_kernel(%arg0: i32, %arg1: i32, %arg2: memref<128x1024xf32, #tpu.memory_space<vmem>>, %arg3: memref<1x128xf32, #tpu.memory_space<vmem>>, %arg4: memref<128x1xf32, #tpu.memory_space<vmem>>) attributes {dimension_semantics = [#tpu.dimension_semantics<parallel>, #tpu.dimension_semantics<arbitrary>], iteration_bounds = array<i64: 2, 1>, scalar_prefetch = 0 : i64, scratch_operands = 1 : i64, tpu.core_type = #tpu.core_type<tc>, window_params = [{transform_indices = @transform_0, window_bounds = array<i64: 128, 1024>}, {transform_indices = @transform_1, window_bounds = array<i64: 1, 128>}]} {
    %c0 = arith.constant 0 : index
    %c0_0 = arith.constant 0 : index
    %0 = vector.load %arg2[%c0, %c0_0] : memref<128x1024xf32, #tpu.memory_space<vmem>>, vector<128x1024xf32>
    %cst = arith.constant dense<0xFF800000> : vector<128xf32>
    %1 = vector.multi_reduction <maximumf>, %0, %cst [1] : vector<128x1024xf32> to vector<128xf32>
    %2 = vector.shape_cast %1 : vector<128xf32> to vector<128x1xf32>
    %c0_i32 = arith.constant 0 : i32
    %3 = arith.cmpi eq, %arg1, %c0_i32 : i32
    %4 = arith.extui %3 : i1 to i32
    %c0_i32_1 = arith.constant 0 : i32
    %5 = arith.cmpi ne, %4, %c0_i32_1 : i32
    scf.if %5 {
      %c0_6 = arith.constant 0 : index
      %c0_7 = arith.constant 0 : index
      %12 = vector.load %arg4[%c0_6, %c0_7] : memref<128x1xf32, #tpu.memory_space<vmem>>, vector<128x1xf32>
      tpu.vector_store %arg4[%c0_6, %c0_7], %2 {strides = array<i32>} : memref<128x1xf32, #tpu.memory_space<vmem>>, vector<128x1xf32>,
    } else {
    }
    %c0_i32_2 = arith.constant 0 : i32
    %6 = arith.cmpi sgt, %arg1, %c0_i32_2 : i32
    %7 = arith.extui %6 : i1 to i32
    %c0_i32_3 = arith.constant 0 : i32
    %8 = arith.cmpi ne, %7, %c0_i32_3 : i32
    scf.if %8 {
      %c0_6 = arith.constant 0 : index
      %c0_7 = arith.constant 0 : index
      %12 = vector.load %arg4[%c0_6, %c0_7] : memref<128x1xf32, #tpu.memory_space<vmem>>, vector<128x1xf32>
      %13 = arith.maximumf %12, %2 : vector<128x1xf32>
      %c0_8 = arith.constant 0 : index
      %c0_9 = arith.constant 0 : index
      %14 = vector.load %arg4[%c0_8, %c0_9] : memref<128x1xf32, #tpu.memory_space<vmem>>, vector<128x1xf32>
      tpu.vector_store %arg4[%c0_8, %c0_9], %13 {strides = array<i32>} : memref<128x1xf32, #tpu.memory_space<vmem>>, vector<128x1xf32>,
    } else {
    }
    %c0_i32_4 = arith.constant 0 : i32
    %9 = arith.cmpi eq, %arg1, %c0_i32_4 : i32
    %10 = arith.extui %9 : i1 to i32
    %c0_i32_5 = arith.constant 0 : i32
    %11 = arith.cmpi ne, %10, %c0_i32_5 : i32
    scf.if %11 {
      %c0_6 = arith.constant 0 : index
      %c0_7 = arith.constant 0 : index
      %12 = vector.load %arg4[%c0_6, %c0_7] : memref<128x1xf32, #tpu.memory_space<vmem>>, vector<128x1xf32>
      %13 = vector.shape_cast %12 : vector<128x1xf32> to vector<128x1xf32>
      %14 = vector.broadcast %13 : vector<128x1xf32> to vector<128x128xf32>
      %15 = tpu.transpose %14, [1, 0] : vector<128x128xf32> -> vector<128x128xf32>
      %cst_8 = arith.constant dense<0xFF800000> : vector<128xf32>
      %16 = vector.multi_reduction <maximumf>, %15, %cst_8 [0] : vector<128x128xf32> to vector<128xf32>
      %17 = vector.shape_cast %16 : vector<128xf32> to vector<1x128xf32>
      %c0_9 = arith.constant 0 : index
      %c0_10 = arith.constant 0 : index
      %18 = vector.load %arg3[%c0_9, %c0_10] : memref<1x128xf32, #tpu.memory_space<vmem>>, vector<1x128xf32>
      tpu.vector_store %arg3[%c0_9, %c0_10], %17 {strides = array<i32>} : memref<1x128xf32, #tpu.memory_space<vmem>>, vector<1x128xf32>,
    } else {
    }
    return
  }
  func.func @transform_0(%arg0: i32, %arg1: i32) -> (i32, i32) {
    %c0_i32 = arith.constant 0 : i32
    return %arg0, %arg1 : i32, i32
  }
  func.func @transform_1(%arg0: i32, %arg1: i32) -> (i32, i32) {
    %c0_i32 = arith.constant 0 : i32
    %c0_i32_0 = arith.constant 0 : i32
    return %c0_i32, %arg0 : i32, i32
  }
}

</mosaic_0001>

<bundles_post_ra>
// kernel: tpu_custom_call.1
= control target key start
LH: loop header
LB: loop body
LE: loop exit
PB: predicated region body
PF: predicated region fallthrough
CT: control target
= control target key end

     0   :  { %6 = vsyncpa [#allocation4], 0  ;;  %s1273_s0 = inlined_call_operand.hbm [shape: f32[256,1024], index: 0, kind: input, shape index: {}]   ;;  %s1274_s1 = inlined_call_operand.hbm [shape: f32[1,256], index: 1, kind: output, shape index: {}]  }
   0x1   :  { %8 = vsyncpa [#allocation4 + $0x1], 0 }
   0x2   :  { %9 = vsyncpa [#allocation5], 0 }
   0x3   :  { %11 = vsyncpa [#allocation5 + $0x1], 0  ;;  %s953_s6 = smov 0   ;;  %s955_s7 = smov 0  }
   0x4   :  { %s957_s8 = smov 0   ;;  %s959_s9 = smov 0  }
   0x5   :  { %s961_s10 = smov 0   ;;  %s963_s11 = smov 0  }
   0x6 LB: > { %s742_s12 = sadd.s32 4294967295, %s936_s11   ;;  %s743_s13 = sadd.s32 4294967294, %s936_s11   ;;  %s936_s11 = sphi %s963_s11, %s17_s11   ;;  %s932_s10 = sphi %s961_s10, %s1289_s10   ;;  %s928_s9 = sphi %s959_s9, %s1288_s9   ;;  %s924_s8 = sphi %s957_s8, %s1287_s8   ;;  %s920_s7 = sphi %s955_s7, %s1286_s7   ;;  %s916_s6 = sphi %s953_s6, %s1285_s6  }
   0x7   : > { %s29_s14 = sadd.s32 1, %s932_s10  ;;  %s38_s15 = sadd.s32 1, %s924_s8 }
   0x8   : > { %p31_p0 = scmp.ge.s32.totalorder %s29_s14, 2  ;;  %p45_p1 = scmp.ne.s32.totalorder %s924_s8, %s920_s7 }
   0x9   : > { %p46_p2 = scmp.eq.s32.totalorder %s936_s11, 0  ;;  %p51_p3 = scmp.ne.s32.totalorder %s920_s7, %s916_s6 }
   0xa   : > { %s1291_s14 = smov (%p31_p0, %s29_s14), 0  ;;  %p52_p5 = scmp.eq.s32.totalorder %s742_s12, 0 }
   0xb   : > { %p994_p4 = por %p46_p2, %p45_p1  ;;  %s33_s17 = ssub.s32 %s932_s10, %s1291_s14 }
   0xc   : > { %p75_p6 = scmp.eq.s32.totalorder %s742_s12, 1  ;;  %p36_p7 = scmp.eq.s32.totalorder %s33_s17, 0 }
   0xd   : > { %p1000_p8 = por %p52_p5, %p51_p3  ;;  %p81_p10 = scmp.eq.s32.totalorder %s743_s13, 1 }
   0xe   : > { %p1004_p9 = por %p75_p6, %p45_p1  ;;  %p769_p13 = scmp.lt.s32.totalorder %s936_s11, 2 }
   0xf   : > { %s1009_s20 = scalar_select %p36_p7, %s924_s8, %s38_s15  }
  0x10   : > { %s1278_s19 = scalar_select %p1004_p9, 1, 0 }
  0x11   : > { %p1011_p11 = por %p81_p10, %p51_p3  ;;  %s101_s22 = sand.u32 1, %s924_s8  }
  0x12   : > { %s746_s23 = sshll.u32 %s101_s22, 10  ;;  %s756_s24 = sshll.u32 %s932_s10, 14 }
  0x13   : > { %s1279_s21 = scalar_select %p1011_p11, 1, 0 }
  0x14   : > { %s1022_s27 = scalar_lea.hbm %s1273_s0, %s756_s24  ;;  %s105_s28 = scalar_lea.vmem [#allocation3], %s746_s23 }
  0x15   : > { %s115_s29 = sshll.u32 %s105_s28, 4  ;;  %p1028_p0 = pnand %p769_p13, %p994_p4  ;;  %s1024_s29 = int_to_ptr.vmem [resolvable:$true] %s115_s29 }
  0x16   : > { %s1033_s2 = scalar_lea.sflag [#allocation4], %s101_s22  ;;  %s824_s3 = scalar_lea.hbm %s1022_s27, 16384 }
  0x17   : > { %p825_p2 = scmp.ne.s32.totalorder %s1022_s27, %s824_s3  ;;  %p826_p3 = pneg %p1028_p0 }
  0x18   : > { %s829_s12 = scalar_lea.hbm %s1273_s0, 32768  ;;  %p830_p4 = scmp.lt.u32.totalorder %s1022_s27, %s1273_s0 }
  0x19   : > { %p827_p5 = pnand %p826_p3, %p825_p2  ;;  %p831_p7 = scmp.lt.u32.totalorder %s829_s12, %s824_s3 }
  0x1a   : > { %p833_p13 = scmp.lt.u32.totalorder %s824_s3, %s1022_s27 }
  0x1b   : > { %p828_p6 = pneg %p827_p5  ;;  %p832_p10 = por %p831_p7, %p830_p4 }
  0x1d   : > { %p834_p12 = por %p833_p13, %p832_p10 }
  0x1f   : > { %p835_p1 = pnand %p834_p12, %p828_p6 }
  0x21   : > { %838 = shalt.err (!%p835_p1)
}
  0x22   : > { %s839_s16 = scalar_lea.vmem %s1024_s29, 16384  ;;  %s938_s17 = smov [#allocation3]  }
  0x23   : > { %p840_p2 = scmp.ne.s32.totalorder %s1024_s29, %s839_s16  ;;  %s844_s22 = sshll.u32 %s938_s17, 4  ;;  %s845_s22 = int_to_ptr.vmem [resolvable:$false] %s844_s22 }
  0x24   : > { %s846_s23 = scalar_lea.vmem %s845_s22, 32768  ;;  %p847_p9 = scmp.lt.s32.totalorder %s1024_s29, %s845_s22 }
  0x25   : > { %p842_p5 = pnand %p840_p2, %p826_p3  ;;  %p848_p4 = scmp.lt.s32.totalorder %s846_s23, %s839_s16 }
  0x27   : > { %p843_p11 = pneg %p842_p5  ;;  %p849_p7 = por %p848_p4, %p847_p9 }
  0x29   : > { %p850_p10 = pnand %p849_p7, %p843_p11 }
  0x2b   : > { %853 = shalt.err (!%p850_p10)
}
  0x2c   : > { %s939_s24 = smov 1024   ;;  %s940_s25 = smov 64  }
  0x2d   : > { %764 = dma.hbm_to_vmem [thread:$0]  (!%p1028_p0), %s1022_s27, 16384, %s1024_s29, %s1033_s2, %s939_s24, %s939_s24, %s940_s25  }
  0x2e   : > { %p123_p12 = scmp.lt.s32.totalorder %s936_s11, 3  ;;  %p1281_p1 = scmp.ge.s32.totalorder %s936_s11, 1 }
  0x30   : > { %p124_p3 = pnand %p1281_p1, %p123_p12 }
  0x31   : > { %s1065_s26 = sand.u32 (!%p124_p3), 1, %s920_s7  }
  0x32   : > { %127 = sbr.rel (%p124_p3) target bundleno = 574 (0x23e), region = 24  ;;  %s751_s28 = sshll.u32 (!%p124_p3), %s1065_s26, 10 }
  0x33   : > { %s130_s3 = scalar_lea.sflag (!%p124_p3), [#allocation4], %s1065_s26  ;;  %s1069_s4 = scalar_lea.vmem (!%p124_p3), [#allocation3], %s751_s28 }
  0x39   : > { %907 = dma.done.wait (%p1000_p8), %s130_s3, 16384  }
  0x3a   : > { %909 = vsyncadd (%p1000_p8), %s130_s3, 4294950912  ;;  %v169_v0 = vld [vmem:[%s1069_s4 + $0x80] sm:$0xff]  ;;  %v170_v1 = vld [vmem:[%s1069_s4 + $0x88] sm:$0xff]  ;;  %vm429_vm0 = vcmask 7168   ;;  %s752_s18 = sshll.u32 %s928_s9, 4  ;;  %s150_s27 = scalar_lea.vmem [#allocation6], %s1065_s26 }
  0x3b   : > { %v171_v2 = vld [vmem:[%s1069_s4 + $0x90] sm:$0xff]  ;;  %v299_v3 = vmax.f32 %v169_v0, %v170_v1  ;;  %v172_v4 = vld [vmem:[%s1069_s4 + $0x98] sm:$0xff]  ;;  %v153_v5 = vld [vmem:[%s1069_s4] sm:$0xff]  ;;  %s665_s29 = sshll.u32 %s150_s27, 4  ;;  %s1224_s5 = scalar_lea.hbm %s1274_s1, %s752_s18  ;;  %s1226_s29 = int_to_ptr.vmem [resolvable:$true] %s665_s29 }
  0x3c   : > { %v154_v7 = vld [vmem:[%s1069_s4 + $0x8] sm:$0xff]  ;;  %v155_v8 = vld [vmem:[%s1069_s4 + $0x10] sm:$0xff]  ;;  %v173_v9 = vld [vmem:[%s1069_s4 + $0xa0] sm:$0xff]  ;;  %s653_s12 = scalar_lea.sflag [#allocation5], %s1065_s26  ;;  %s854_s13 = scalar_lea.vmem %s1226_s29, 16 }
  0x3d   : > { %v300_v6 = vmax.f32 %v299_v3, %v171_v2  ;;  %v281_v10 = vmax.f32 %v153_v5, %v154_v7  ;;  %v156_v12 = vld [vmem:[%s1069_s4 + $0x18] sm:$0xff]  ;;  %v177_v13 = vld [vmem:[%s1069_s4 + $0xc0] sm:$0xff]  ;;  %v178_v14 = vld [vmem:[%s1069_s4 + $0xc8] sm:$0xff]  ;;  %p855_p8 = scmp.ne.s32.totalorder %s1226_s29, %s854_s13  ;;  %p1282_p9 = scmp.ne.s32.totalorder %s1278_s19, 0 }
  0x3e   : > { %v174_v15 = vld [vmem:[%s1069_s4 + $0xa8] sm:$0xff]  ;;  %v179_v17 = vld [vmem:[%s1069_s4 + $0xd0] sm:$0xff]  ;;  %v308_v18 = vmax.f32 %v177_v13, %v178_v14  ;;  %v157_v21 = vld [vmem:[%s1069_s4 + $0x20] sm:$0xff]  ;;  %s942_s9 = smov [#allocation6]  }
  0x3f   : > { %v301_v11 = vmax.f32 %v300_v6, %v172_v4  ;;  %v282_v16 = vmax.f32 %v281_v10, %v155_v8  ;;  %v175_v19 = vld [vmem:[%s1069_s4 + $0xb0] sm:$0xff]  ;;  %v180_v22 = vld [vmem:[%s1069_s4 + $0xd8] sm:$0xff]  ;;  %v161_v25 = vld [vmem:[%s1069_s4 + $0x40] sm:$0xff]  ;;  %p856_p11 = pnand %p855_p8, %p1282_p9  ;;  %s858_s15 = sshll.u32 %s942_s9, 4  ;;  %s859_s15 = int_to_ptr.vmem [resolvable:$false] %s858_s15 }
  0x40   : > { %v309_v24 = vmax.f32 %v308_v18, %v179_v17  ;;  %v162_v26 = vld [vmem:[%s1069_s4 + $0x48] sm:$0xff]  ;;  %v163_v27 = vld [vmem:[%s1069_s4 + $0x50] sm:$0xff]  ;;  %v176_v28 = vld [vmem:[%s1069_s4 + $0xb8] sm:$0xff]  ;;  %s860_s16 = scalar_lea.vmem %s859_s15, 32  ;;  %p861_p6 = scmp.lt.s32.totalorder %s1226_s29, %s859_s15 }
  0x41   : > { %v302_v20 = vmax.f32 %v301_v11, %v173_v9  ;;  %v283_v23 = vmax.f32 %v282_v16, %v156_v12  ;;  %v158_v30 = vld [vmem:[%s1069_s4 + $0x28] sm:$0xff]  ;;  %v181_v31 = vld [vmem:[%s1069_s4 + $0xe0] sm:$0xff]  ;;  %v290_v32 = vmax.f32 %v161_v25, %v162_v26  ;;  %v159_v33 = vld [vmem:[%s1069_s4 + $0x30] sm:$0xff]  ;;  %p857_p0 = pneg %p856_p11  ;;  %p862_p13 = scmp.lt.s32.totalorder %s860_s16, %s854_s13 }
  0x42   : > { %v310_v35 = vmax.f32 %v309_v24, %v180_v22  ;;  %v164_v36 = vld [vmem:[%s1069_s4 + $0x58] sm:$0xff]  ;;  %v193_v37 = vld [vmem:[%s1069_s4 + $0x140] sm:$0xff]  ;;  %v182_v39 = vld [vmem:[%s1069_s4 + $0xe8] sm:$0xff] }
  0x43   : > { %v303_v29 = vmax.f32 %v302_v20, %v174_v15  ;;  %v284_v34 = vmax.f32 %v283_v23, %v157_v21  ;;  %v291_v40 = vmax.f32 %v290_v32, %v163_v27  ;;  %v194_v41 = vld [vmem:[%s1069_s4 + $0x148] sm:$0xff]  ;;  %v195_v42 = vld [vmem:[%s1069_s4 + $0x150] sm:$0xff]  ;;  %v160_v43 = vld [vmem:[%s1069_s4 + $0x38] sm:$0xff]  ;;  %p863_p2 = por %p862_p13, %p861_p6 }
  0x44   : > { %v183_v45 = vld [vmem:[%s1069_s4 + $0xf0] sm:$0xff]  ;;  %v311_v46 = vmax.f32 %v310_v35, %v181_v31  ;;  %v165_v47 = vld [vmem:[%s1069_s4 + $0x60] sm:$0xff]  ;;  %v326_v48 = vmax.f32 %v193_v37, %v194_v41  ;;  %v196_v51 = vld [vmem:[%s1069_s4 + $0x158] sm:$0xff] }
  0x45   : > { %v304_v38 = vmax.f32 %v303_v29, %v175_v19  ;;  %v285_v44 = vmax.f32 %v284_v34, %v158_v30  ;;  %v292_v50 = vmax.f32 %v291_v40, %v164_v36  ;;  %v209_v52 = vld [vmem:[%s1069_s4 + $0x1c0] sm:$0xff]  ;;  %v210_v53 = vld [vmem:[%s1069_s4 + $0x1c8] sm:$0xff]  ;;  %v184_v55 = vld [vmem:[%s1069_s4 + $0xf8] sm:$0xff]  ;;  %p864_p5 = pnand %p863_p2, %p857_p0 }
  0x46   : > { %v312_v56 = vmax.f32 %v311_v46, %v182_v39  ;;  %v166_v57 = vld [vmem:[%s1069_s4 + $0x68] sm:$0xff]  ;;  %v327_v58 = vmax.f32 %v326_v48, %v195_v42  ;;  %v211_v59 = vld [vmem:[%s1069_s4 + $0x1d0] sm:$0xff]  ;;  %v344_v60 = vmax.f32 %v209_v52, %v210_v53  ;;  %v197_v63 = vld [vmem:[%s1069_s4 + $0x160] sm:$0xff] }
  0x47   : > { %v305_v49 = vmax.f32 %v304_v38, %v176_v28  ;;  %v286_v54 = vmax.f32 %v285_v44, %v159_v33  ;;  %v167_v61 = vld [vmem:[%s1069_s4 + $0x70] sm:$0xff]  ;;  %v293_v62 = vmax.f32 %v292_v50, %v165_v47  ;;  %v212_v0 = vld [vmem:[%s1069_s4 + $0x1d8] sm:$0xff]  ;;  %v225_v5 = vld [vmem:[%s1069_s4 + $0x240] sm:$0xff] }
  0x48   : > { %v313_v2 = vmax.f32 %v312_v56, %v183_v45  ;;  %v328_v3 = vmax.f32 %v327_v58, %v196_v51  ;;  %v345_v4 = vmax.f32 %v344_v60, %v211_v59  ;;  %v226_v6 = vld [vmem:[%s1069_s4 + $0x248] sm:$0xff]  ;;  %v227_v7 = vld [vmem:[%s1069_s4 + $0x250] sm:$0xff]  ;;  %v168_v8 = vld [vmem:[%s1069_s4 + $0x78] sm:$0xff] }
  0x49   : > { %306 = vmax.xlane.f32.xlu1 %v305_v49  ;;  %v287_v1 = vmax.f32 %v286_v54, %v160_v43  ;;  %v294_v9 = vmax.f32 %v293_v62, %v166_v57  ;;  %v198_v10 = vld [vmem:[%s1069_s4 + $0x168] sm:$0xff]  ;;  %v213_v11 = vld [vmem:[%s1069_s4 + $0x1e0] sm:$0xff]  ;;  %v362_v12 = vmax.f32 %v225_v5, %v226_v6  ;;  %v199_v14 = vld [vmem:[%s1069_s4 + $0x170] sm:$0xff] }
  0x4a   : > { %v314_v13 = vmax.f32 %v313_v2, %v184_v55  ;;  %v329_v15 = vmax.f32 %v328_v3, %v197_v63  ;;  %v346_v16 = vmax.f32 %v345_v4, %v212_v0  ;;  %v228_v17 = vld [vmem:[%s1069_s4 + $0x258] sm:$0xff]  ;;  %v185_v18 = vld [vmem:[%s1069_s4 + $0x100] sm:$0xff]  ;;  %v214_v20 = vld [vmem:[%s1069_s4 + $0x1e8] sm:$0xff] }
  0x4b   : > { %288 = vmax.xlane.f32.xlu0 %v287_v1  ;;  %v295_v19 = vmax.f32 %v294_v9, %v167_v61  ;;  %v363_v21 = vmax.f32 %v362_v12, %v227_v7  ;;  %v186_v22 = vld [vmem:[%s1069_s4 + $0x108] sm:$0xff]  ;;  %v187_v23 = vld [vmem:[%s1069_s4 + $0x110] sm:$0xff]  ;;  %v200_v24 = vld [vmem:[%s1069_s4 + $0x178] sm:$0xff] }
  0x4c   : > { %v330_v25 = vmax.f32 %v329_v15, %v198_v10  ;;  %v215_v26 = vld [vmem:[%s1069_s4 + $0x1f0] sm:$0xff]  ;;  %v347_v27 = vmax.f32 %v346_v16, %v213_v11  ;;  %v229_v28 = vld [vmem:[%s1069_s4 + $0x260] sm:$0xff]  ;;  %v317_v29 = vmax.f32 %v185_v18, %v186_v22  ;;  %v188_v32 = vld [vmem:[%s1069_s4 + $0x118] sm:$0xff] }
  0x4d   : > { %315 = vmax.xlane.f32.xlu1 %v314_v13  ;;  %v296_v30 = vmax.f32 %v295_v19, %v168_v8  ;;  %v364_v31 = vmax.f32 %v363_v21, %v228_v17  ;;  %v241_v33 = vld [vmem:[%s1069_s4 + $0x2c0] sm:$0xff]  ;;  %v242_v34 = vld [vmem:[%s1069_s4 + $0x2c8] sm:$0xff]  ;;  %v216_v36 = vld [vmem:[%s1069_s4 + $0x1f8] sm:$0xff] }
  0x4e   : > { %v331_v35 = vmax.f32 %v330_v25, %v199_v14  ;;  %v348_v37 = vmax.f32 %v347_v27, %v214_v20  ;;  %v230_v38 = vld [vmem:[%s1069_s4 + $0x268] sm:$0xff]  ;;  %v318_v39 = vmax.f32 %v317_v29, %v187_v23  ;;  %v243_v40 = vld [vmem:[%s1069_s4 + $0x2d0] sm:$0xff]  ;;  %v380_v41 = vmax.f32 %v241_v33, %v242_v34  ;;  %v189_v44 = vld [vmem:[%s1069_s4 + $0x120] sm:$0xff] }
  0x4f   : > { %297 = vmax.xlane.f32.xlu0 %v296_v30  ;;  %v231_v42 = vld [vmem:[%s1069_s4 + $0x270] sm:$0xff]  ;;  %v365_v43 = vmax.f32 %v364_v31, %v229_v28  ;;  %v244_v45 = vld [vmem:[%s1069_s4 + $0x2d8] sm:$0xff]  ;;  %v257_v50 = vld [vmem:[%s1069_s4 + $0x340] sm:$0xff] }
  0x50   : > { %v332_v46 = vmax.f32 %v331_v35, %v200_v24  ;;  %v349_v47 = vmax.f32 %v348_v37, %v215_v26  ;;  %v319_v48 = vmax.f32 %v318_v39, %v188_v32  ;;  %v381_v49 = vmax.f32 %v380_v41, %v243_v40  ;;  %v258_v51 = vld [vmem:[%s1069_s4 + $0x348] sm:$0xff]  ;;  %v259_v52 = vld [vmem:[%s1069_s4 + $0x350] sm:$0xff]  ;;  %v232_v53 = vld [vmem:[%s1069_s4 + $0x278] sm:$0xff] }
  0x51   : > { %v366_v54 = vmax.f32 %v365_v43, %v230_v38  ;;  %v190_v55 = vld [vmem:[%s1069_s4 + $0x128] sm:$0xff]  ;;  %v245_v56 = vld [vmem:[%s1069_s4 + $0x2e0] sm:$0xff]  ;;  %v398_v57 = vmax.f32 %v257_v50, %v258_v51  ;;  %v191_v59 = vld [vmem:[%s1069_s4 + $0x130] sm:$0xff] }
  0x52   : > { %333 = vmax.xlane.f32.xlu1 %v332_v46  ;;  %v350_v58 = vmax.f32 %v349_v47, %v216_v36  ;;  %v320_v60 = vmax.f32 %v319_v48, %v189_v44  ;;  %v382_v61 = vmax.f32 %v381_v49, %v244_v45  ;;  %v260_v62 = vld [vmem:[%s1069_s4 + $0x358] sm:$0xff]  ;;  %v201_v63 = vld [vmem:[%s1069_s4 + $0x180] sm:$0xff]  ;;  %v246_v1 = vld [vmem:[%s1069_s4 + $0x2e8] sm:$0xff] }
  0x53   : > { %v367_v0 = vmax.f32 %v366_v54, %v231_v42  ;;  %v399_v2 = vmax.f32 %v398_v57, %v259_v52  ;;  %v202_v3 = vld [vmem:[%s1069_s4 + $0x188] sm:$0xff]  ;;  %v203_v4 = vld [vmem:[%s1069_s4 + $0x190] sm:$0xff]  ;;  %v192_v5 = vld [vmem:[%s1069_s4 + $0x138] sm:$0xff] }
  0x54   : > { %v321_v6 = vmax.f32 %v320_v60, %v190_v55  ;;  %v247_v7 = vld [vmem:[%s1069_s4 + $0x2f0] sm:$0xff]  ;;  %v383_v8 = vmax.f32 %v382_v61, %v245_v56  ;;  %v261_v9 = vld [vmem:[%s1069_s4 + $0x360] sm:$0xff]  ;;  %v335_v10 = vmax.f32 %v201_v63, %v202_v3  ;;  %v204_v13 = vld [vmem:[%s1069_s4 + $0x198] sm:$0xff] }
  0x55   : > { %v368_v11 = vmax.f32 %v367_v0, %v232_v53  ;;  %v400_v12 = vmax.f32 %v399_v2, %v260_v62  ;;  %v273_v14 = vld [vmem:[%s1069_s4 + $0x3c0] sm:$0xff]  ;;  %v274_v15 = vld [vmem:[%s1069_s4 + $0x3c8] sm:$0xff]  ;;  %v248_v17 = vld [vmem:[%s1069_s4 + $0x2f8] sm:$0xff] }
  0x56   : > { %351 = vmax.xlane.f32.xlu1 %v350_v58  ;;  %v322_v16 = vmax.f32 %v321_v6, %v191_v59  ;;  %v384_v18 = vmax.f32 %v383_v8, %v246_v1  ;;  %v262_v19 = vld [vmem:[%s1069_s4 + $0x368] sm:$0xff]  ;;  %v336_v20 = vmax.f32 %v335_v10, %v203_v4  ;;  %v275_v21 = vld [vmem:[%s1069_s4 + $0x3d0] sm:$0xff]  ;;  %v416_v22 = vmax.f32 %v273_v14, %v274_v15  ;;  %v205_v25 = vld [vmem:[%s1069_s4 + $0x1a0] sm:$0xff] }
  0x57   : > { %v263_v23 = vld [vmem:[%s1069_s4 + $0x370] sm:$0xff]  ;;  %v401_v24 = vmax.f32 %v400_v12, %v261_v9  ;;  %v276_v26 = vld [vmem:[%s1069_s4 + $0x3d8] sm:$0xff]  ;;  %v217_v31 = vld [vmem:[%s1069_s4 + $0x200] sm:$0xff]  ;;  %v941_v8 = vmov 0  }
  0x58   : > { %v323_v27 = vmax.f32 %v322_v16, %v192_v5  ;;  %v385_v28 = vmax.f32 %v384_v18, %v247_v7  ;;  %v337_v29 = vmax.f32 %v336_v20, %v204_v13  ;;  %v417_v30 = vmax.f32 %v416_v22, %v275_v21  ;;  %v218_v32 = vld [vmem:[%s1069_s4 + $0x208] sm:$0xff]  ;;  %v219_v33 = vld [vmem:[%s1069_s4 + $0x210] sm:$0xff]  ;;  %v264_v34 = vld [vmem:[%s1069_s4 + $0x378] sm:$0xff]  ;;  %822 = vset.pattern.permute.xlu0 %v941_v8 }
  0x59   : > { %v402_v35 = vmax.f32 %v401_v24, %v262_v19  ;;  %v206_v36 = vld [vmem:[%s1069_s4 + $0x1a8] sm:$0xff]  ;;  %v277_v37 = vld [vmem:[%s1069_s4 + $0x3e0] sm:$0xff]  ;;  %v353_v38 = vmax.f32 %v217_v31, %v218_v32  ;;  %v207_v40 = vld [vmem:[%s1069_s4 + $0x1b0] sm:$0xff]  ;;  %823 = vset.pattern.permute.xlu1 %v941_v8 }
  0x5a   : > { %369 = vmax.xlane.f32.xlu1 %v368_v11  ;;  %324 = vmax.xlane.f32.xlu0 %v323_v27  ;;  %v386_v39 = vmax.f32 %v385_v28, %v248_v17  ;;  %v338_v41 = vmax.f32 %v337_v29, %v205_v25  ;;  %v418_v42 = vmax.f32 %v417_v30, %v276_v26  ;;  %v220_v43 = vld [vmem:[%s1069_s4 + $0x218] sm:$0xff]  ;;  %v233_v44 = vld [vmem:[%s1069_s4 + $0x280] sm:$0xff]  ;;  %v278_v46 = vld [vmem:[%s1069_s4 + $0x3e8] sm:$0xff] }
  0x5b   : > { %v403_v45 = vmax.f32 %v402_v35, %v263_v23  ;;  %v354_v47 = vmax.f32 %v353_v38, %v219_v33  ;;  %v234_v48 = vld [vmem:[%s1069_s4 + $0x288] sm:$0xff]  ;;  %v235_v49 = vld [vmem:[%s1069_s4 + $0x290] sm:$0xff]  ;;  %v208_v50 = vld [vmem:[%s1069_s4 + $0x1b8] sm:$0xff] }
  0x5c   : > { %v339_v51 = vmax.f32 %v338_v41, %v206_v36  ;;  %v279_v52 = vld [vmem:[%s1069_s4 + $0x3f0] sm:$0xff]  ;;  %v419_v53 = vmax.f32 %v418_v42, %v277_v37  ;;  %v221_v54 = vld [vmem:[%s1069_s4 + $0x220] sm:$0xff]  ;;  %v371_v55 = vmax.f32 %v233_v44, %v234_v48  ;;  %v236_v58 = vld [vmem:[%s1069_s4 + $0x298] sm:$0xff] }
  0x5d   : > { %v404_v56 = vmax.f32 %v403_v45, %v264_v34  ;;  %v355_v57 = vmax.f32 %v354_v47, %v220_v43  ;;  %v249_v59 = vld [vmem:[%s1069_s4 + $0x300] sm:$0xff]  ;;  %v250_v60 = vld [vmem:[%s1069_s4 + $0x308] sm:$0xff]  ;;  %v280_v62 = vld [vmem:[%s1069_s4 + $0x3f8] sm:$0xff] }
  0x5e   : > { %387 = vmax.xlane.f32.xlu1 %v386_v39  ;;  %v340_v61 = vmax.f32 %v339_v51, %v207_v40  ;;  %v420_v63 = vmax.f32 %v419_v53, %v278_v46  ;;  %v222_v0 = vld [vmem:[%s1069_s4 + $0x228] sm:$0xff]  ;;  %v372_v1 = vmax.f32 %v371_v55, %v235_v49  ;;  %v251_v2 = vld [vmem:[%s1069_s4 + $0x310] sm:$0xff]  ;;  %v389_v3 = vmax.f32 %v249_v59, %v250_v60  ;;  %v237_v6 = vld [vmem:[%s1069_s4 + $0x2a0] sm:$0xff] }
  0x5f   : > { %v223_v4 = vld [vmem:[%s1069_s4 + $0x230] sm:$0xff]  ;;  %v356_v5 = vmax.f32 %v355_v57, %v221_v54  ;;  %v252_v7 = vld [vmem:[%s1069_s4 + $0x318] sm:$0xff]  ;;  %v265_v13 = vld [vmem:[%s1069_s4 + $0x380] sm:$0xff] }
  0x60   : > { %v341_v9 = vmax.f32 %v340_v61, %v208_v50  ;;  %v421_v10 = vmax.f32 %v420_v63, %v279_v52  ;;  %v373_v11 = vmax.f32 %v372_v1, %v236_v58  ;;  %v390_v12 = vmax.f32 %v389_v3, %v251_v2  ;;  %v266_v14 = vld [vmem:[%s1069_s4 + $0x388] sm:$0xff]  ;;  %v267_v15 = vld [vmem:[%s1069_s4 + $0x390] sm:$0xff]  ;;  %v253_v18 = vld [vmem:[%s1069_s4 + $0x320] sm:$0xff] }
  0x61   : > { %v357_v16 = vmax.f32 %v356_v5, %v222_v0  ;;  %v238_v17 = vld [vmem:[%s1069_s4 + $0x2a8] sm:$0xff]  ;;  %v407_v19 = vmax.f32 %v265_v13, %v266_v14  ;;  %v224_v21 = vld [vmem:[%s1069_s4 + $0x238] sm:$0xff]  ;;  %v239_v26 = vld [vmem:[%s1069_s4 + $0x2b0] sm:$0xff] }
  0x62   : > { %405 = vmax.xlane.f32.xlu1 %v404_v56  ;;  %342 = vmax.xlane.f32.xlu0 %v341_v9  ;;  %v422_v20 = vmax.f32 %v421_v10, %v280_v62  ;;  %v374_v22 = vmax.f32 %v373_v11, %v237_v6  ;;  %v391_v23 = vmax.f32 %v390_v12, %v252_v7  ;;  %v268_v24 = vld [vmem:[%s1069_s4 + $0x398] sm:$0xff]  ;;  %v254_v27 = vld [vmem:[%s1069_s4 + $0x328] sm:$0xff]  ;;  %v269_v31 = vld [vmem:[%s1069_s4 + $0x3a0] sm:$0xff] }
  0x63   : > { %v358_v25 = vmax.f32 %v357_v16, %v223_v4  ;;  %v408_v28 = vmax.f32 %v407_v19, %v267_v15  ;;  %v240_v33 = vld [vmem:[%s1069_s4 + $0x2b8] sm:$0xff]  ;;  %v255_v34 = vld [vmem:[%s1069_s4 + $0x330] sm:$0xff]  ;;  %v270_v38 = vld [vmem:[%s1069_s4 + $0x3a8] sm:$0xff] }
  0x64   : > { %v375_v29 = vmax.f32 %v374_v22, %v238_v17  ;;  %v392_v30 = vmax.f32 %v391_v23, %v253_v18  ;;  %v256_v41 = vld [vmem:[%s1069_s4 + $0x338] sm:$0xff]  ;;  %v271_v43 = vld [vmem:[%s1069_s4 + $0x3b0] sm:$0xff] }
  0x65   : > { %v359_v32 = vmax.f32 %v358_v25, %v224_v21  ;;  %v409_v35 = vmax.f32 %v408_v28, %v268_v24  ;;  %v272_v47 = vld [vmem:[%s1069_s4 + $0x3b8] sm:$0xff] }
  0x66   : > { %423 = vmax.xlane.f32.xlu1 %v422_v20  ;;  %v376_v36 = vmax.f32 %v375_v29, %v239_v26  ;;  %v393_v37 = vmax.f32 %v392_v30, %v254_v27 }
  0x67   : > { %360 = vmax.xlane.f32.xlu0 %v359_v32  ;;  %v410_v39 = vmax.f32 %v409_v35, %v269_v31 }
  0x68   : > { %v377_v40 = vmax.f32 %v376_v36, %v240_v33  ;;  %v394_v42 = vmax.f32 %v393_v37, %v255_v34 }
  0x69   : > { %v411_v44 = vmax.f32 %v410_v39, %v270_v38 }
  0x6a   : > { %v395_v45 = vmax.f32 %v394_v42, %v256_v41 }
  0x6b   : > { %378 = vmax.xlane.f32.xlu0 %v377_v40  ;;  %v412_v46 = vmax.f32 %v411_v44, %v271_v43 }
  0x6d   : > { %v413_v48 = vmax.f32 %v412_v46, %v272_v47 }
  0x6f   : > { %396 = vmax.xlane.f32.xlu0 %v395_v45 }
  0x73   : > { %414 = vmax.xlane.f32.xlu0 %v413_v48 }
  0xd6   : > { %v307_v49 = vpop.xlane.xlu1 %306 }
  0xd7   : > { %432 = vst.msk [vmem:[#allocation2 + $0x10] sm:$0xff] %vm429_vm0, %v307_v49 }
  0xd8   : > { %v289_v50 = vpop.xlane.xlu0 %288 }
  0xd9   : > { %430 = vst.msk [vmem:[#allocation2] sm:$0xff] %vm429_vm0, %v289_v50 }
  0xda   : > { %v316_v51 = vpop.xlane.xlu1 %315 }
  0xdb   : > { %433 = vst.msk [vmem:[#allocation2 + $0x18] sm:$0xff] %vm429_vm0, %v316_v51 }
  0xdc   : > { %v298_v52 = vpop.xlane.xlu0 %297 }
  0xdd   : > { %431 = vst.msk [vmem:[#allocation2 + $0x8] sm:$0xff] %vm429_vm0, %v298_v52 }
  0xde   : > { %v504_v57 = vld [vmem:[#allocation2 + $0x10] sm:$0xff] }
  0xdf   : > { %v334_v53 = vpop.xlane.xlu1 %333 }
  0xe0   : > { %v502_v54 = vld [vmem:[#allocation2] sm:$0xff]  ;;  %435 = vst.msk [vmem:[#allocation2 + $0x28] sm:$0xff] %vm429_vm0, %v334_v53 }
  0xe1   : > { %520 = vperm.xlu0 %822, %v502_v54  }
  0xe2   : > { %v505_v60 = vld [vmem:[#allocation2 + $0x18] sm:$0xff] }
  0xe3   : > { %v352_v55 = vpop.xlane.xlu1 %351 }
  0xe4   : > { %437 = vst.msk [vmem:[#allocation2 + $0x38] sm:$0xff] %vm429_vm0, %v352_v55  ;;  %v503_v56 = vld [vmem:[#allocation2 + $0x8] sm:$0xff] }
  0xe5   : > { %525 = vperm.xlu1 %823, %v503_v56  }
  0xe7   : > { %v370_v58 = vpop.xlane.xlu1 %369  ;;  %v325_v59 = vpop.xlane.xlu0 %324  ;;  %v507_v2 = vld [vmem:[#allocation2 + $0x28] sm:$0xff] }
  0xe8   : > { %439 = vst.msk [vmem:[#allocation2 + $0x48] sm:$0xff] %vm429_vm0, %v370_v58  ;;  %434 = vst.msk [vmem:[#allocation2 + $0x20] sm:$0xff] %vm429_vm0, %v325_v59 }
  0xe9   : > { %530 = vperm.xlu1 %823, %v504_v57  }
  0xeb   : > { %v388_v61 = vpop.xlane.xlu1 %387  ;;  %v509_v9 = vld [vmem:[#allocation2 + $0x38] sm:$0xff] }
  0xec   : > { %441 = vst.msk [vmem:[#allocation2 + $0x58] sm:$0xff] %vm429_vm0, %v388_v61 }
  0xed   : > { %535 = vperm.xlu1 %823, %v505_v60  }
  0xef   : > { %v406_v62 = vpop.xlane.xlu1 %405  ;;  %v343_v63 = vpop.xlane.xlu0 %342  ;;  %v511_v0 = vld [vmem:[#allocation2 + $0x48] sm:$0xff]  ;;  %v506_v1 = vld [vmem:[#allocation2 + $0x20] sm:$0xff] }
  0xf0   : > { %443 = vst.msk [vmem:[#allocation2 + $0x68] sm:$0xff] %vm429_vm0, %v406_v62  ;;  %436 = vst.msk [vmem:[#allocation2 + $0x30] sm:$0xff] %vm429_vm0, %v343_v63  ;;  %565 = vperm.xlu0 %822, %v511_v0  }
  0xf1   : > { %540 = vperm.xlu1 %823, %v506_v1  }
  0xf3   : > { %v424_v3 = vpop.xlane.xlu1 %423  ;;  %v513_v4 = vld [vmem:[#allocation2 + $0x58] sm:$0xff] }
  0xf4   : > { %445 = vst.msk [vmem:[#allocation2 + $0x78] sm:$0xff] %vm429_vm0, %v424_v3  ;;  %575 = vperm.xlu0 %822, %v513_v4   ;;  %v361_v5 = vpop.xlane.xlu0 %360 }
  0xf5   : > { %545 = vperm.xlu1 %823, %v507_v2   ;;  %438 = vst.msk [vmem:[#allocation2 + $0x40] sm:$0xff] %vm429_vm0, %v361_v5 }
  0xf7   : > { %v515_v6 = vld [vmem:[#allocation2 + $0x68] sm:$0xff]  ;;  %v508_v7 = vld [vmem:[#allocation2 + $0x30] sm:$0xff] }
  0xf8   : > { %585 = vperm.xlu0 %822, %v515_v6   ;;  %v379_v8 = vpop.xlane.xlu0 %378 }
  0xf9   : > { %550 = vperm.xlu1 %823, %v508_v7   ;;  %440 = vst.msk [vmem:[#allocation2 + $0x50] sm:$0xff] %vm429_vm0, %v379_v8 }
  0xfb   : > { %v517_v10 = vld [vmem:[#allocation2 + $0x78] sm:$0xff] }
  0xfc   : > { %595 = vperm.xlu0 %822, %v517_v10   ;;  %v397_v11 = vpop.xlane.xlu0 %396  ;;  %v510_v12 = vld [vmem:[#allocation2 + $0x40] sm:$0xff] }
  0xfd   : > { %555 = vperm.xlu1 %823, %v509_v9   ;;  %442 = vst.msk [vmem:[#allocation2 + $0x60] sm:$0xff] %vm429_vm0, %v397_v11 }
 0x100   : > { %v415_v13 = vpop.xlane.xlu0 %414  ;;  %v512_v14 = vld [vmem:[#allocation2 + $0x50] sm:$0xff] }
 0x101   : > { %560 = vperm.xlu1 %823, %v510_v12   ;;  %444 = vst.msk [vmem:[#allocation2 + $0x70] sm:$0xff] %vm429_vm0, %v415_v13 }
 0x104   : > { %v514_v15 = vld [vmem:[#allocation2 + $0x60] sm:$0xff] }
 0x105   : > { %570 = vperm.xlu1 %823, %v512_v14  }
 0x108   : > { %v516_v16 = vld [vmem:[#allocation2 + $0x70] sm:$0xff] }
 0x109   : > { %580 = vperm.xlu1 %823, %v514_v15  }
 0x10d   : > { %590 = vperm.xlu1 %823, %v516_v16  }
 0x160   : > { %v521_v17 = vpop.permute.xlu0 %520 }
 0x161   : > { %598 = vxpose.xlu1.b32.start [1/16] %v521_v17, 128 }
 0x164   : > { %v526_v18 = vpop.permute.xlu1 %525 }
 0x165   : > { %599 = vxpose.xlu1.b32.cont [2/16] %v526_v18, 128 }
 0x168   : > { %v531_v19 = vpop.permute.xlu1 %530 }
 0x169   : > { %600 = vxpose.xlu1.b32.cont [3/16] %v531_v19, 128 }
 0x16c   : > { %v536_v20 = vpop.permute.xlu1 %535 }
 0x16d   : > { %601 = vxpose.xlu1.b32.cont [4/16] %v536_v20, 128 }
 0x16f   : > { %v566_v26 = vpop.permute.xlu0 %565 }
 0x170   : > { %v541_v21 = vpop.permute.xlu1 %540 }
 0x171   : > { %602 = vxpose.xlu1.b32.cont [5/16] %v541_v21, 128 }
 0x173   : > { %v576_v28 = vpop.permute.xlu0 %575 }
 0x174   : > { %v546_v22 = vpop.permute.xlu1 %545 }
 0x175   : > { %603 = vxpose.xlu1.b32.cont [6/16] %v546_v22, 128 }
 0x177   : > { %v586_v30 = vpop.permute.xlu0 %585 }
 0x178   : > { %v551_v23 = vpop.permute.xlu1 %550 }
 0x179   : > { %604 = vxpose.xlu1.b32.cont [7/16] %v551_v23, 128 }
 0x17b   : > { %v596_v32 = vpop.permute.xlu0 %595 }
 0x17c   : > { %v556_v24 = vpop.permute.xlu1 %555 }
 0x17d   : > { %605 = vxpose.xlu1.b32.cont [8/16] %v556_v24, 128 }
 0x180   : > { %v561_v25 = vpop.permute.xlu1 %560 }
 0x181   : > { %606 = vxpose.xlu1.b32.cont [9/16] %v561_v25, 128 }
 0x184   : > { %v571_v27 = vpop.permute.xlu1 %570 }
 0x185   : > { %607 = vxpose.xlu1.b32.cont [10/16] %v566_v26, 128 }
 0x188   : > { %v581_v29 = vpop.permute.xlu1 %580 }
 0x189   : > { %608 = vxpose.xlu1.b32.cont [11/16] %v571_v27, 128 }
 0x18c   : > { %v591_v31 = vpop.permute.xlu1 %590 }
 0x18d   : > { %609 = vxpose.xlu1.b32.cont [12/16] %v576_v28, 128 }
 0x191   : > { %610 = vxpose.xlu1.b32.cont [13/16] %v581_v29, 128 }
 0x195   : > { %611 = vxpose.xlu1.b32.cont [14/16] %v586_v30, 128 }
 0x199   : > { %612 = vxpose.xlu1.b32.cont [15/16] %v591_v31, 128 }
 0x19d   : > { %613 = vxpose.xlu1.b32.end [16/16] %v596_v32, 128 }
 0x1e1   : > { %v614_v33 = vpop.trf.xlu1 }
 0x1e5   : > { %v615_v34 = vpop.trf.xlu1 }
 0x1e9   : > { %v616_v35 = vpop.trf.xlu1 }
 0x1ed   : > { %v617_v36 = vpop.trf.xlu1 }
 0x1f1   : > { %v618_v37 = vpop.trf.xlu1 }
 0x1f2   : > { %v630_v49 = vmax.f32 %v614_v33, %v618_v37 }
 0x1f5   : > { %v619_v38 = vpop.trf.xlu1 }
 0x1f6   : > { %v631_v47 = vmax.f32 %v615_v34, %v619_v38 }
 0x1f9   : > { %v620_v39 = vpop.trf.xlu1 }
 0x1fa   : > { %v632_v50 = vmax.f32 %v616_v35, %v620_v39 }
 0x1fd   : > { %v621_v40 = vpop.trf.xlu1 }
 0x1fe   : > { %v633_v51 = vmax.f32 %v617_v36, %v621_v40 }
 0x201   : > { %v622_v41 = vpop.trf.xlu1 }
 0x202   : > { %v634_v53 = vmax.f32 %v630_v49, %v622_v41 }
 0x205   : > { %v623_v42 = vpop.trf.xlu1 }
 0x206   : > { %v635_v52 = vmax.f32 %v631_v47, %v623_v42 }
 0x209   : > { %v624_v43 = vpop.trf.xlu1 }
 0x20a   : > { %v636_v54 = vmax.f32 %v632_v50, %v624_v43 }
 0x20d   : > { %v625_v44 = vpop.trf.xlu1 }
 0x20e   : > { %v637_v55 = vmax.f32 %v633_v51, %v625_v44 }
 0x211   : > { %v626_v45 = vpop.trf.xlu1 }
 0x212   : > { %v638_v58 = vmax.f32 %v634_v53, %v626_v45 }
 0x215   : > { %v627_v46 = vpop.trf.xlu1 }
 0x216   : > { %v639_v56 = vmax.f32 %v635_v52, %v627_v46 }
 0x218   : > { %v642_v61 = vmax.f32 %v638_v58, %v639_v56 }
 0x219   : > { %v628_v48 = vpop.trf.xlu1 }
 0x21a   : > { %v640_v59 = vmax.f32 %v636_v54, %v628_v48 }
 0x21d   : > { %v629_v57 = vpop.trf.xlu1 }
 0x21e   : > { %v641_v60 = vmax.f32 %v637_v55, %v629_v57 }
 0x220   : > { %v643_v62 = vmax.f32 %v640_v59, %v641_v60 }
 0x222   : > { %v644_v63 = vmax.f32 %v642_v61, %v643_v62 }
 0x224   : > { %v645_v0 = vrot.slane %v644_v63, 4 }
 0x226   : > { %v646_v1 = vmax.f32 %v644_v63, %v645_v0 }
 0x228   : > { %v647_v2 = vrot.slane %v646_v1, 2 }
 0x22a   : > { %v648_v3 = vmax.f32 %v646_v1, %v647_v2 }
 0x22c   : > { %v649_v4 = vrot.slane %v648_v3, 1 }
 0x22e   : > { %v650_v5 = vmax.f32 %v648_v3, %v649_v4 }
 0x230   : > { %651 = vst [vmem:[%s150_s27] sm:$0x1] %v650_v5 }
 0x231   : > { %867 = shalt.err (!%p864_p5)
}
 0x232   : > { %s868_s17 = scalar_lea.hbm %s1224_s5, 16  ;;  %s872_s24 = scalar_lea.hbm %s1274_s1, 32 }
 0x233   : > { %p869_p4 = scmp.ne.s32.totalorder %s1224_s5, %s868_s17  ;;  %p873_p12 = scmp.lt.u32.totalorder %s1224_s5, %s1274_s1 }
 0x234   : > { %p874_p1 = scmp.lt.u32.totalorder %s872_s24, %s868_s17  ;;  %p876_p8 = scmp.lt.u32.totalorder %s868_s17, %s1224_s5 }
 0x235   : > { %p870_p7 = pnand %p869_p4, %p1282_p9 }
 0x236   : > { %p875_p3 = por %p874_p1, %p873_p12 }
 0x237   : > { %p871_p10 = pneg %p870_p7 }
 0x238   : > { %p877_p11 = por %p876_p8, %p875_p3 }
 0x23a   : > { %p878_p0 = pnand %p877_p11, %p871_p10 }
 0x23c   : > { %881 = shalt.err (!%p878_p0)
}
 0x23d   : > { %759 = dma.vmem_to_hbm [thread:$0]  (%p1282_p9), %s1226_s29, 16, %s1224_s5, %s653_s12  }
 0x23e PF: > { %s677_s28 = sand.u32 1, %s916_s6   ;;  %p1283_p6 = scmp.ne.s32.totalorder %s1279_s21, 0 }
 0x23f   : > { %p1284_p13 = scmp.ge.s32.totalorder %s936_s11, 2  ;;  %s678_s3 = scalar_lea.sflag [#allocation5], %s677_s28 }
 0x241   : > { %p766_p2 = pnand %p1284_p13, %p1283_p6 }
 0x243   : > { %911 = dma.done.wait (!%p766_p2), %s678_s3, 16  }
 0x244   : > { %913 = vsyncadd (!%p766_p2), %s678_s3, 4294967280  ;;  %s17_s11 = sadd.s32 1, %s936_s11   ;;  %s1285_s6 = smov %s920_s7 }
 0x245   : > { %p14_p5 = scmp.ge.s32.totalorder %s17_s11, 4   ;;  %s1286_s7 = smov %s924_s8 }
 0x246   : > { %s1287_s8 = smov %s1009_s20  ;;  %s1288_s9 = smov %s932_s10 }
 0x247   : > { %s1289_s10 = smov %s1291_s14  ;;  %16 = sbr.rel (!%p14_p5) target bundleno = 6 (0x6), region = 81 }
 0x24e   :  { %682 = vsyncpa [#allocation4], 1 }
 0x24f   :  { %684 = vsyncpa [#allocation4 + $0x1], 1 }
 0x250   :  { %685 = vsyncpa [#allocation5], 1 }
 0x251   :  { %687 = vsyncpa [#allocation5 + $0x1], 1 }

</bundles_post_ra>
